<compile_context>
chip_gen: v6e
topology: v6e:2x2x1
jax: 0.10.0
libtpu: 0.0.40
codegen_flags: <defaults>
</compile_context>

<pallas_src>
import functools

import jax
import jax.numpy as jnp
from jax.experimental import pallas as pl
from jax.experimental.pallas import tpu as pltpu


def _round_up(a, b):
    return (a + b - 1) // b * b


def _cdiv(a, b):
    return (a + b - 1) // b


def _mlp_kernel(x_ref,
                w1_ref, b1_ref,
                w2_ref, b2_ref,
                w3_ref, b3_ref,
                w4_ref, b4_ref,
                o_ref):
    """One batch tile of the full 4-layer MLP.

    x_ref : (TM, D_in)   f32 flattened images (one batch tile) — cast to bf16
                         here so no bf16 copy of x is ever written to HBM.
    wK    : (in, out)    bf16 weights (pre-transposed vs. nn.Linear)
    bK    : (1, out)     f32 biases (2-D for clean sublane broadcast)
    o_ref : (TM, 128)    bf16 logits, lane-padded (true classes in [:, :10])
    """
    # Fused cast on the VPU (review item 1): MXU inputs are bf16, accum is f32.
    x = x_ref[...].astype(jnp.bfloat16)

    # Linear(D_in -> H) + ReLU
    h = jnp.dot(x, w1_ref[...], preferred_element_type=jnp.float32) + b1_ref[...]
    h = jnp.maximum(h, 0.0).astype(jnp.bfloat16)

    # Linear(H -> H) + ReLU
    h = jnp.dot(h, w2_ref[...], preferred_element_type=jnp.float32) + b2_ref[...]
    h = jnp.maximum(h, 0.0).astype(jnp.bfloat16)

    # Linear(H -> H) + ReLU
    h = jnp.dot(h, w3_ref[...], preferred_element_type=jnp.float32) + b3_ref[...]
    h = jnp.maximum(h, 0.0).astype(jnp.bfloat16)

    # Linear(H -> 128 lane-padded classes), no activation (logits)
    logits = jnp.dot(h, w4_ref[...], preferred_element_type=jnp.float32) + b4_ref[...]
    o_ref[...] = logits.astype(o_ref.dtype)


@functools.partial(jax.jit, static_argnames=("tm", "min_steps"))
def cifar10_mlp_forward(x_nchw, params, *, tm=512, min_steps=2):
    """Forward pass.

    x_nchw: (N, C, H, W) float32 (bf16 also accepted).
    params: dict of f32 weights (in,out) / biases (1,out).
    Returns (N, num_classes) bf16 logits.
    """
    n = x_nchw.shape[0]
    d_in = x_nchw.shape[1] * x_nchw.shape[2] * x_nchw.shape[3]
    hidden = params["w1"].shape[1]
    num_classes = params["w4"].shape[1]
    out_pad = _round_up(num_classes, 128)   # lane-dense output store

    # nn.Flatten(): (N, C, H, W) -> (N, C*H*W), row-major like PyTorch.
    # NOTE: no dtype cast here — the kernel casts the VMEM tile (review item 1).
    x_flat = x_nchw.reshape(n, d_in)

    # Balanced batch tiling (review item 2): padding stays < 8 rows per tile.
    num_tiles = max(_cdiv(n, tm), 1)
    # v7x megacore (review item 3): guarantee >= min_steps grid steps when the
    # batch is large enough, so both TensorCores get work.  No-op on v5e/v6e.
    if num_tiles < min_steps and n >= 8 * min_steps:
        num_tiles = min_steps
    tm_eff = _round_up(_cdiv(n, num_tiles), 8)
    n_pad = num_tiles * tm_eff
    if n_pad != n:
        x_flat = jnp.pad(x_flat, ((0, n_pad - n), (0, 0)))

    # bf16 weights stay VMEM-resident via constant index_maps; f32 biases for
    # the f32 bias-add.  Final layer padded to 128 output lanes with zeros.
    # VMEM budget @ TM=512 (f32 x): 2 x 512 x 3072 x 4B = 12 MiB (x)
    #   + ~1.7 MiB (weights, double-buffered) + ~0.25 MiB (bf16 out) ≈ 14 MiB,
    # comfortably under the 32 MiB scoped limit on v5e/v6e/v7x.
    # TODO(synk): resident weight specs could use pipeline_mode=pl.Buffered(1)
    # to drop ~0.85 MiB of duplicate buffers; kept default double-buffering
    # for broad JAX-version compatibility (negligible at this VMEM budget).
    w1 = params["w1"].astype(jnp.bfloat16)
    w2 = params["w2"].astype(jnp.bfloat16)
    w3 = params["w3"].astype(jnp.bfloat16)
    w4 = jnp.pad(params["w4"].astype(jnp.bfloat16),
                 ((0, 0), (0, out_pad - num_classes)))
    b1, b2, b3 = params["b1"], params["b2"], params["b3"]
    b4 = jnp.pad(params["b4"], ((0, 0), (0, out_pad - num_classes)))

    grid = (num_tiles,)

    x_spec = pl.BlockSpec((tm_eff, d_in), lambda i: (i, 0))
    out_spec = pl.BlockSpec((tm_eff, out_pad), lambda i: (i, 0))

    def resident(shape):
        # Constant index_map -> weights/biases fetched once, stay in VMEM
        # across all grid steps.
        return pl.BlockSpec(shape, lambda i: (0, 0))

    out = pl.pallas_call(
        _mlp_kernel,
        out_shape=jax.ShapeDtypeStruct((n_pad, out_pad), jnp.bfloat16),
        grid=grid,
        in_specs=[
            x_spec,
            resident((d_in, hidden)), resident((1, hidden)),
            resident((hidden, hidden)), resident((1, hidden)),
            resident((hidden, hidden)), resident((1, hidden)),
            resident((hidden, out_pad)), resident((1, out_pad)),
        ],
        out_specs=out_spec,
        compiler_params=pltpu.CompilerParams(
            dimension_semantics=("parallel",),          # megacore sharding on v7x
            vmem_limit_bytes=32 * 1024 * 1024,          # explicit, safe on v5e..v7x
        ),
    )(x_flat, w1, b1, w2, b2, w3, b3, w4, b4)

    return out[:n, :num_classes]


def init_params(key, input_size, hidden_size, num_classes):
    """Deterministic synthetic init (shapes match nn.Linear layers)."""
    ks = jax.random.split(key, 8)

    def linear(kw, kb, fan_in, fan_out):
        # Kaiming-uniform-ish bound like PyTorch's default Linear init.
        bound = 1.0 / jnp.sqrt(jnp.float32(fan_in))
        w = jax.random.uniform(kw, (fan_in, fan_out), jnp.float32, -bound, bound)
        b = jax.random.uniform(kb, (1, fan_out), jnp.float32, -bound, bound)
        return w, b

    w1, b1 = linear(ks[0], ks[1], input_size, hidden_size)
    w2, b2 = linear(ks[2], ks[3], hidden_size, hidden_size)
    w3, b3 = linear(ks[4], ks[5], hidden_size, hidden_size)
    w4, b4 = linear(ks[6], ks[7], hidden_size, num_classes)
    return dict(w1=w1, b1=b1, w2=w2, b2=b2, w3=w3, b3=b3, w4=w4, b4=b4)


def reference_forward(x_nchw, params):
    """Pure-JAX reference with matching bf16-input / f32-accumulate math."""
    x = x_nchw.reshape(x_nchw.shape[0], -1).astype(jnp.bfloat16)
    w1 = params["w1"].astype(jnp.bfloat16)
    w2 = params["w2"].astype(jnp.bfloat16)
    w3 = params["w3"].astype(jnp.bfloat16)
    w4 = params["w4"].astype(jnp.bfloat16)

    h = jnp.dot(x, w1, preferred_element_type=jnp.float32) + params["b1"]
    h = jnp.maximum(h, 0.0).astype(jnp.bfloat16)
    h = jnp.dot(h, w2, preferred_element_type=jnp.float32) + params["b2"]
    h = jnp.maximum(h, 0.0).astype(jnp.bfloat16)
    h = jnp.dot(h, w3, preferred_element_type=jnp.float32) + params["b3"]
    h = jnp.maximum(h, 0.0).astype(jnp.bfloat16)
    return jnp.dot(h, w4, preferred_element_type=jnp.float32) + params["b4"]


if __name__ == "__main__":
    # CIFAR-10 geometry from the module: input_size = 3*32*32, 10 classes.
    batch = 2
    input_size = 3 * 32 * 32
    hidden_size = 128
    num_classes = 10

    key = jax.random.PRNGKey(0)
    k_x, k_p = jax.random.split(key)
    x = jax.random.normal(k_x, (batch, 3, 32, 32), jnp.float32)
    params = init_params(k_p, input_size, hidden_size, num_classes)

    out = cifar10_mlp_forward(x, params)
    out = jax.block_until_ready(out)

    ref = reference_forward(x, params)
    assert out.shape == (batch, num_classes), out.shape
    # Kernel emits bf16 logits; compare in f32 with bf16-appropriate tolerance.
    err = jnp.max(jnp.abs(out.astype(jnp.float32) - ref))
    assert jnp.allclose(out.astype(jnp.float32), ref, atol=3e-2, rtol=3e-2), (
        f"max abs err {err}")

    print("KERNEL_OK")
</pallas_src>

<mosaic_0001>
module attributes {stable_mosaic.version = 11 : i64} {
  func.func @_mlp_kernel(%arg0: i32, %arg1: memref<8x3072xf32, #tpu.memory_space<vmem>>, %arg2: memref<3072x128xbf16, #tpu.memory_space<vmem>>, %arg3: memref<1x128xf32, #tpu.memory_space<vmem>>, %arg4: memref<128x128xbf16, #tpu.memory_space<vmem>>, %arg5: memref<1x128xf32, #tpu.memory_space<vmem>>, %arg6: memref<128x128xbf16, #tpu.memory_space<vmem>>, %arg7: memref<1x128xf32, #tpu.memory_space<vmem>>, %arg8: memref<128x128xbf16, #tpu.memory_space<vmem>>, %arg9: memref<1x128xf32, #tpu.memory_space<vmem>>, %arg10: memref<8x128xbf16, #tpu.memory_space<vmem>>) attributes {dimension_semantics = [#tpu.dimension_semantics<parallel>], iteration_bounds = array<i64: 1>, scalar_prefetch = 0 : i64, scratch_operands = 0 : i64, tpu.core_type = #tpu.core_type<tc>, window_params = [{transform_indices = @transform_0, window_bounds = array<i64: 8, 3072>}, {pipeline_mode = #tpu.pipeline_mode<synchronous>, transform_indices = @transform_1, window_bounds = array<i64: 3072, 128>}, {pipeline_mode = #tpu.pipeline_mode<synchronous>, transform_indices = @transform_2, window_bounds = array<i64: 1, 128>}, {pipeline_mode = #tpu.pipeline_mode<synchronous>, transform_indices = @transform_3, window_bounds = array<i64: 128, 128>}, {pipeline_mode = #tpu.pipeline_mode<synchronous>, transform_indices = @transform_4, window_bounds = array<i64: 1, 128>}, {pipeline_mode = #tpu.pipeline_mode<synchronous>, transform_indices = @transform_5, window_bounds = array<i64: 128, 128>}, {pipeline_mode = #tpu.pipeline_mode<synchronous>, transform_indices = @transform_6, window_bounds = array<i64: 1, 128>}, {pipeline_mode = #tpu.pipeline_mode<synchronous>, transform_indices = @transform_7, window_bounds = array<i64: 128, 128>}, {pipeline_mode = #tpu.pipeline_mode<synchronous>, transform_indices = @transform_8, window_bounds = array<i64: 1, 128>}, {transform_indices = @transform_9, window_bounds = array<i64: 8, 128>}]} {
    %c0 = arith.constant 0 : index
    %c0_0 = arith.constant 0 : index
    %0 = vector.load %arg1[%c0, %c0_0] : memref<8x3072xf32, #tpu.memory_space<vmem>>, vector<8x3072xf32>
    %1 = arith.truncf %0 : vector<8x3072xf32> to vector<8x3072xbf16>
    %c0_1 = arith.constant 0 : index
    %c0_2 = arith.constant 0 : index
    %2 = vector.load %arg2[%c0_1, %c0_2] : memref<3072x128xbf16, #tpu.memory_space<vmem>>, vector<3072x128xbf16>
    %cst = arith.constant dense<0.000000e+00> : vector<8x128xf32>
    %3 = tpu.matmul %1, %2, %cst {dimension_numbers = #tpu.dot_dimension_numbers<[1], [0], [0], [1], [0, 0, 1, 1], [], []>} : vector<8x3072xbf16>, vector<3072x128xbf16>, vector<8x128xf32> -> vector<8x128xf32>
    %c0_3 = arith.constant 0 : index
    %c0_4 = arith.constant 0 : index
    %4 = vector.load %arg3[%c0_3, %c0_4] : memref<1x128xf32, #tpu.memory_space<vmem>>, vector<1x128xf32>
    %5 = vector.broadcast %4 : vector<1x128xf32> to vector<8x128xf32>
    %6 = arith.addf %3, %5 : vector<8x128xf32>
    %cst_5 = arith.constant 0.000000e+00 : f32
    %7 = vector.broadcast %cst_5 : f32 to vector<8x128xf32>
    %8 = arith.maximumf %6, %7 : vector<8x128xf32>
    %9 = arith.truncf %8 : vector<8x128xf32> to vector<8x128xbf16>
    %c0_6 = arith.constant 0 : index
    %c0_7 = arith.constant 0 : index
    %10 = vector.load %arg4[%c0_6, %c0_7] : memref<128x128xbf16, #tpu.memory_space<vmem>>, vector<128x128xbf16>
    %cst_8 = arith.constant dense<0.000000e+00> : vector<8x128xf32>
    %11 = tpu.matmul %9, %10, %cst_8 {dimension_numbers = #tpu.dot_dimension_numbers<[1], [0], [0], [1], [0, 0, 1, 1], [], []>} : vector<8x128xbf16>, vector<128x128xbf16>, vector<8x128xf32> -> vector<8x128xf32>
    %c0_9 = arith.constant 0 : index
    %c0_10 = arith.constant 0 : index
    %12 = vector.load %arg5[%c0_9, %c0_10] : memref<1x128xf32, #tpu.memory_space<vmem>>, vector<1x128xf32>
    %13 = vector.broadcast %12 : vector<1x128xf32> to vector<8x128xf32>
    %14 = arith.addf %11, %13 : vector<8x128xf32>
    %cst_11 = arith.constant 0.000000e+00 : f32
    %15 = vector.broadcast %cst_11 : f32 to vector<8x128xf32>
    %16 = arith.maximumf %14, %15 : vector<8x128xf32>
    %17 = arith.truncf %16 : vector<8x128xf32> to vector<8x128xbf16>
    %c0_12 = arith.constant 0 : index
    %c0_13 = arith.constant 0 : index
    %18 = vector.load %arg6[%c0_12, %c0_13] : memref<128x128xbf16, #tpu.memory_space<vmem>>, vector<128x128xbf16>
    %cst_14 = arith.constant dense<0.000000e+00> : vector<8x128xf32>
    %19 = tpu.matmul %17, %18, %cst_14 {dimension_numbers = #tpu.dot_dimension_numbers<[1], [0], [0], [1], [0, 0, 1, 1], [], []>} : vector<8x128xbf16>, vector<128x128xbf16>, vector<8x128xf32> -> vector<8x128xf32>
    %c0_15 = arith.constant 0 : index
    %c0_16 = arith.constant 0 : index
    %20 = vector.load %arg7[%c0_15, %c0_16] : memref<1x128xf32, #tpu.memory_space<vmem>>, vector<1x128xf32>
    %21 = vector.broadcast %20 : vector<1x128xf32> to vector<8x128xf32>
    %22 = arith.addf %19, %21 : vector<8x128xf32>
    %cst_17 = arith.constant 0.000000e+00 : f32
    %23 = vector.broadcast %cst_17 : f32 to vector<8x128xf32>
    %24 = arith.maximumf %22, %23 : vector<8x128xf32>
    %25 = arith.truncf %24 : vector<8x128xf32> to vector<8x128xbf16>
    %c0_18 = arith.constant 0 : index
    %c0_19 = arith.constant 0 : index
    %26 = vector.load %arg8[%c0_18, %c0_19] : memref<128x128xbf16, #tpu.memory_space<vmem>>, vector<128x128xbf16>
    %cst_20 = arith.constant dense<0.000000e+00> : vector<8x128xf32>
    %27 = tpu.matmul %25, %26, %cst_20 {dimension_numbers = #tpu.dot_dimension_numbers<[1], [0], [0], [1], [0, 0, 1, 1], [], []>} : vector<8x128xbf16>, vector<128x128xbf16>, vector<8x128xf32> -> vector<8x128xf32>
    %c0_21 = arith.constant 0 : index
    %c0_22 = arith.constant 0 : index
    %28 = vector.load %arg9[%c0_21, %c0_22] : memref<1x128xf32, #tpu.memory_space<vmem>>, vector<1x128xf32>
    %29 = vector.broadcast %28 : vector<1x128xf32> to vector<8x128xf32>
    %30 = arith.addf %27, %29 : vector<8x128xf32>
    %31 = arith.truncf %30 : vector<8x128xf32> to vector<8x128xbf16>
    %c0_23 = arith.constant 0 : index
    %c0_24 = arith.constant 0 : index
    %32 = vector.load %arg10[%c0_23, %c0_24] : memref<8x128xbf16, #tpu.memory_space<vmem>>, vector<8x128xbf16>
    tpu.vector_store %arg10[%c0_23, %c0_24], %31 {strides = array<i32>} : memref<8x128xbf16, #tpu.memory_space<vmem>>, vector<8x128xbf16>,
    return
  }
  func.func @transform_0(%arg0: i32) -> (i32, i32) {
    %c0_i32 = arith.constant 0 : i32
    %c0_i32_0 = arith.constant 0 : i32
    return %arg0, %c0_i32 : i32, i32
  }
  func.func @transform_1(%arg0: i32) -> (i32, i32) {
    %c0_i32 = arith.constant 0 : i32
    %c0_i32_0 = arith.constant 0 : i32
    %c0_i32_1 = arith.constant 0 : i32
    return %c0_i32, %c0_i32_0 : i32, i32
  }
  func.func @transform_2(%arg0: i32) -> (i32, i32) {
    %c0_i32 = arith.constant 0 : i32
    %c0_i32_0 = arith.constant 0 : i32
    %c0_i32_1 = arith.constant 0 : i32
    return %c0_i32, %c0_i32_0 : i32, i32
  }
  func.func @transform_3(%arg0: i32) -> (i32, i32) {
    %c0_i32 = arith.constant 0 : i32
    %c0_i32_0 = arith.constant 0 : i32
    %c0_i32_1 = arith.constant 0 : i32
    return %c0_i32, %c0_i32_0 : i32, i32
  }
  func.func @transform_4(%arg0: i32) -> (i32, i32) {
    %c0_i32 = arith.constant 0 : i32
    %c0_i32_0 = arith.constant 0 : i32
    %c0_i32_1 = arith.constant 0 : i32
    return %c0_i32, %c0_i32_0 : i32, i32
  }
  func.func @transform_5(%arg0: i32) -> (i32, i32) {
    %c0_i32 = arith.constant 0 : i32
    %c0_i32_0 = arith.constant 0 : i32
    %c0_i32_1 = arith.constant 0 : i32
    return %c0_i32, %c0_i32_0 : i32, i32
  }
  func.func @transform_6(%arg0: i32) -> (i32, i32) {
    %c0_i32 = arith.constant 0 : i32
    %c0_i32_0 = arith.constant 0 : i32
    %c0_i32_1 = arith.constant 0 : i32
    return %c0_i32, %c0_i32_0 : i32, i32
  }
  func.func @transform_7(%arg0: i32) -> (i32, i32) {
    %c0_i32 = arith.constant 0 : i32
    %c0_i32_0 = arith.constant 0 : i32
    %c0_i32_1 = arith.constant 0 : i32
    return %c0_i32, %c0_i32_0 : i32, i32
  }
  func.func @transform_8(%arg0: i32) -> (i32, i32) {
    %c0_i32 = arith.constant 0 : i32
    %c0_i32_0 = arith.constant 0 : i32
    %c0_i32_1 = arith.constant 0 : i32
    return %c0_i32, %c0_i32_0 : i32, i32
  }
  func.func @transform_9(%arg0: i32) -> (i32, i32) {
    %c0_i32 = arith.constant 0 : i32
    %c0_i32_0 = arith.constant 0 : i32
    return %arg0, %c0_i32 : i32, i32
  }
}

</mosaic_0001>

<bundles_post_ra>
// kernel: cifar10_mlp_forward.1
= control target key start
LH: loop header
LB: loop body
LE: loop exit
PB: predicated region body
PF: predicated region fallthrough
CT: control target
= control target key end

     0   :  { %vm3239_vm0 = vmmov 0   ;;  %s4055_s1 = inlined_call_operand.vmem [shape: bf16[3072,128], index: 1, kind: input, shape index: {}]   ;;  %s4056_s0 = inlined_call_operand.vmem [shape: f32[8,3072], index: 0, kind: input, shape index: {}]   ;;  %s4057_s2 = inlined_call_operand.vmem [shape: f32[1,128], index: 2, kind: input, shape index: {}]   ;;  %s4058_s3 = inlined_call_operand.vmem [shape: bf16[128,128], index: 3, kind: input, shape index: {}]   ;;  %s4059_s5 = inlined_call_operand.vmem [shape: bf16[128,128], index: 5, kind: input, shape index: {}]   ;;  %s4060_s7 = inlined_call_operand.vmem [shape: bf16[128,128], index: 7, kind: input, shape index: {}]   ;;  %s4061_s4 = inlined_call_operand.vmem [shape: f32[1,128], index: 4, kind: input, shape index: {}]   ;;  %s4062_s6 = inlined_call_operand.vmem [shape: f32[1,128], index: 6, kind: input, shape index: {}]   ;;  %s4063_s8 = inlined_call_operand.vmem [shape: f32[1,128], index: 8, kind: input, shape index: {}]   ;;  %s4064_s9 = inlined_call_operand.vmem [shape: bf16[8,128], index: 9, kind: output, shape index: {}]  }
   0x1   :  { %v3022_v0 = vld [vmem:[%s4055_s1 + $0x78] sm:$0xff]   ;;  %v3026_v4 = vld [vmem:[%s4055_s1 + $0x70] sm:$0xff]   ;;  %v3030_v8 = vld [vmem:[%s4055_s1 + $0x68] sm:$0xff]  }
   0x2   :  { %v3023_v1 = vld [vmem:[%s4055_s1 + $0xf8] sm:$0xff]   ;;  %2669 = vmatprep.subr.bf16.mxu0 %v3022_v0  ;;  %v3027_v5 = vld [vmem:[%s4055_s1 + $0xf0] sm:$0xff]   ;;  %v3031_v9 = vld [vmem:[%s4055_s1 + $0xe8] sm:$0xff]  }
   0x3   :  { %v3024_v2 = vld [vmem:[%s4055_s1 + $0x38] sm:$0xff]   ;;  %2691 = vmatprep.subr.bf16.mxu1 %v3023_v1  ;;  %v3028_v6 = vld [vmem:[%s4055_s1 + $0x30] sm:$0xff]   ;;  %v3032_v10 = vld [vmem:[%s4055_s1 + $0x28] sm:$0xff]  }
   0x4   :  { %v3025_v3 = vld [vmem:[%s4055_s1 + $0xb8] sm:$0xff]   ;;  %2670 = vmatpush3.bf16.msra.mxu0 %v3024_v2  ;;  %v3029_v7 = vld [vmem:[%s4055_s1 + $0xb0] sm:$0xff]   ;;  %v3033_v11 = vld [vmem:[%s4055_s1 + $0xa8] sm:$0xff]  }
   0x5   :  { %2692 = vmatpush3.bf16.msra.mxu1 %v3025_v3  ;;  %2671 = vmatprep.subr.bf16.mxu0 %v3026_v4  ;;  %v3034_v12 = vld [vmem:[%s4055_s1 + $0x60] sm:$0xff]   ;;  %v3038_v16 = vld [vmem:[%s4055_s1 + $0x58] sm:$0xff]   ;;  %v3042_v20 = vld [vmem:[%s4055_s1 + $0x50] sm:$0xff]  }
   0x6   :  { %2693 = vmatprep.subr.bf16.mxu1 %v3027_v5  ;;  %v3035_v13 = vld [vmem:[%s4055_s1 + $0xe0] sm:$0xff]   ;;  %v3039_v17 = vld [vmem:[%s4055_s1 + $0xd8] sm:$0xff]   ;;  %v3043_v21 = vld [vmem:[%s4055_s1 + $0xd0] sm:$0xff]  }
   0x7   :  { %v3036_v14 = vld [vmem:[%s4055_s1 + $0x20] sm:$0xff]   ;;  %v3040_v18 = vld [vmem:[%s4055_s1 + $0x18] sm:$0xff]   ;;  %v3044_v22 = vld [vmem:[%s4055_s1 + $0x10] sm:$0xff]  }
   0x8   :  { %2672 = vmatpush3.bf16.msra.mxu0 %v3028_v6  ;;  %v3037_v15 = vld [vmem:[%s4055_s1 + $0xa0] sm:$0xff]   ;;  %v3041_v19 = vld [vmem:[%s4055_s1 + $0x98] sm:$0xff]   ;;  %v3045_v23 = vld [vmem:[%s4055_s1 + $0x90] sm:$0xff]  }
   0x9   :  { %2694 = vmatpush3.bf16.msra.mxu1 %v3029_v7  ;;  %2673 = vmatprep.subr.bf16.mxu0 %v3030_v8  ;;  %v3046_v24 = vld [vmem:[%s4055_s1 + $0x48] sm:$0xff]   ;;  %v3050_v28 = vld [vmem:[%s4055_s1 + $0x40] sm:$0xff]   ;;  %v36_v33 = vld [vmem:[%s4056_s0 + $0x18] sm:$0xff] }
   0xa   :  { %2695 = vmatprep.subr.bf16.mxu1 %v3031_v9  ;;  %v3047_v25 = vld [vmem:[%s4055_s1 + $0xc8] sm:$0xff]   ;;  %v3051_v29 = vld [vmem:[%s4055_s1 + $0xc0] sm:$0xff]   ;;  %v60_v36 = vpack.c.bf16 %v36_v33, %v36_v33  ;;  %v35_v38 = vld [vmem:[%s4056_s0 + $0x10] sm:$0xff] }
   0xb   :  { %v3048_v26 = vld [vmem:[%s4055_s1 + $0x8] sm:$0xff]   ;;  %v3052_v30 = vld [vmem:[%s4055_s1] sm:$0xff]   ;;  %v59_v39 = vpack.c.bf16 %v35_v38, %v35_v38  ;;  %v3054_v40 = vld [vmem:[%s4055_s1 + $0x178] sm:$0xff]  }
   0xc   :  { %2674 = vmatpush3.bf16.msra.mxu0 %v3032_v10  ;;  %v3049_v27 = vld [vmem:[%s4055_s1 + $0x88] sm:$0xff]   ;;  %v3053_v31 = vld [vmem:[%s4055_s1 + $0x80] sm:$0xff]   ;;  %1696 = vmatprep.mubr.bf16.mxu1 %v60_v36  ;;  %v3055_v41 = vld [vmem:[%s4055_s1 + $0x1f8] sm:$0xff]  }
   0xd   :  { %2696 = vmatpush3.bf16.msra.mxu1 %v3033_v11  ;;  %2675 = vmatprep.subr.bf16.mxu0 %v3034_v12  ;;  %v34_v32 = vld [vmem:[%s4056_s0 + $0x8] sm:$0xff]  ;;  %v33_v34 = vld [vmem:[%s4056_s0] sm:$0xff]  ;;  %v3056_v42 = vld [vmem:[%s4055_s1 + $0x138] sm:$0xff]  }
   0xe   :  { %2697 = vmatprep.subr.bf16.mxu1 %v3035_v13  ;;  %v58_v35 = vpack.c.bf16 %v34_v32, %v34_v32  ;;  %v57_v37 = vpack.c.bf16 %v33_v34, %v33_v34  ;;  %v3057_v43 = vld [vmem:[%s4055_s1 + $0x1b8] sm:$0xff]   ;;  %v3058_v44 = vld [vmem:[%s4055_s1 + $0x170] sm:$0xff]   ;;  %v3062_v48 = vld [vmem:[%s4055_s1 + $0x168] sm:$0xff]  }
   0xf   :  { %v3059_v45 = vld [vmem:[%s4055_s1 + $0x1f0] sm:$0xff]   ;;  %v3063_v49 = vld [vmem:[%s4055_s1 + $0x1e8] sm:$0xff]   ;;  %v3066_v52 = vld [vmem:[%s4055_s1 + $0x160] sm:$0xff]  }
  0x10   :  { %2676 = vmatpush3.bf16.msra.mxu0 %v3036_v14  ;;  %1656 = vmatprep.mubr.bf16.mxu0 %v58_v35  ;;  %v3060_v46 = vld [vmem:[%s4055_s1 + $0x130] sm:$0xff]   ;;  %v3064_v50 = vld [vmem:[%s4055_s1 + $0x128] sm:$0xff]   ;;  %v3067_v53 = vld [vmem:[%s4055_s1 + $0x1e0] sm:$0xff]  }
  0x11   :  { %2698 = vmatpush3.bf16.msra.mxu1 %v3037_v15  ;;  %2677 = vmatprep.subr.bf16.mxu0 %v3038_v16  ;;  %v3061_v47 = vld [vmem:[%s4055_s1 + $0x1b0] sm:$0xff]   ;;  %v3065_v51 = vld [vmem:[%s4055_s1 + $0x1a8] sm:$0xff]   ;;  %v3068_v54 = vld [vmem:[%s4055_s1 + $0x120] sm:$0xff]  }
  0x12   :  { %2699 = vmatprep.subr.bf16.mxu1 %v3039_v17  ;;  %v3069_v55 = vld [vmem:[%s4055_s1 + $0x1a0] sm:$0xff]   ;;  %v3070_v56 = vld [vmem:[%s4055_s1 + $0x158] sm:$0xff]   ;;  %v3074_v60 = vld [vmem:[%s4055_s1 + $0x150] sm:$0xff]  }
  0x13   :  { %v3071_v57 = vld [vmem:[%s4055_s1 + $0x1d8] sm:$0xff]   ;;  %v3075_v61 = vld [vmem:[%s4055_s1 + $0x1d0] sm:$0xff]   ;;  %v3078_v0 = vld [vmem:[%s4055_s1 + $0x148] sm:$0xff]  }
  0x14   :  { %2678 = vmatpush3.bf16.msra.mxu0 %v3040_v18  ;;  %v3072_v58 = vld [vmem:[%s4055_s1 + $0x118] sm:$0xff]   ;;  %v3076_v62 = vld [vmem:[%s4055_s1 + $0x110] sm:$0xff]   ;;  %v3079_v1 = vld [vmem:[%s4055_s1 + $0x1c8] sm:$0xff]  }
  0x15   :  { %2700 = vmatpush3.bf16.msra.mxu1 %v3041_v19  ;;  %2679 = vmatprep.subr.bf16.mxu0 %v3042_v20  ;;  %v3073_v59 = vld [vmem:[%s4055_s1 + $0x198] sm:$0xff]   ;;  %v3077_v63 = vld [vmem:[%s4055_s1 + $0x190] sm:$0xff]   ;;  %v3080_v2 = vld [vmem:[%s4055_s1 + $0x108] sm:$0xff]  }
  0x16   :  { %2701 = vmatprep.subr.bf16.mxu1 %v3043_v21  ;;  %v3081_v3 = vld [vmem:[%s4055_s1 + $0x188] sm:$0xff]   ;;  %v3082_v4 = vld [vmem:[%s4055_s1 + $0x140] sm:$0xff]   ;;  %v40_v9 = vld [vmem:[%s4056_s0 + $0x38] sm:$0xff] }
  0x17   :  { %v3083_v5 = vld [vmem:[%s4055_s1 + $0x1c0] sm:$0xff]   ;;  %v38_v8 = vld [vmem:[%s4056_s0 + $0x28] sm:$0xff]  ;;  %v64_v11 = vpack.c.bf16 %v40_v9, %v40_v9  ;;  %v39_v13 = vld [vmem:[%s4056_s0 + $0x30] sm:$0xff] }
  0x18   :  { %2680 = vmatpush3.bf16.msra.mxu0 %v3044_v22  ;;  %v3084_v6 = vld [vmem:[%s4055_s1 + $0x100] sm:$0xff]   ;;  %v62_v10 = vpack.c.bf16 %v38_v8, %v38_v8  ;;  %v63_v15 = vpack.c.bf16 %v39_v13, %v39_v13  ;;  %v3086_v16 = vld [vmem:[%s4055_s1 + $0x278] sm:$0xff]   ;;  %v3090_v20 = vld [vmem:[%s4055_s1 + $0x270] sm:$0xff]  }
  0x19   :  { %2702 = vmatpush3.bf16.msra.mxu1 %v3045_v23  ;;  %2681 = vmatprep.subr.bf16.mxu0 %v3046_v24  ;;  %v3085_v7 = vld [vmem:[%s4055_s1 + $0x180] sm:$0xff]   ;;  %v3087_v17 = vld [vmem:[%s4055_s1 + $0x2f8] sm:$0xff]   ;;  %v3091_v21 = vld [vmem:[%s4055_s1 + $0x2f0] sm:$0xff]  }
  0x1a   :  { %2703 = vmatprep.subr.bf16.mxu1 %v3047_v25  ;;  %v37_v12 = vld [vmem:[%s4056_s0 + $0x20] sm:$0xff]  ;;  %v3088_v18 = vld [vmem:[%s4055_s1 + $0x238] sm:$0xff]   ;;  %v3092_v22 = vld [vmem:[%s4055_s1 + $0x230] sm:$0xff]  }
  0x1b   :  { %v61_v14 = vpack.c.bf16 %v37_v12, %v37_v12  ;;  %v3089_v19 = vld [vmem:[%s4055_s1 + $0x2b8] sm:$0xff]   ;;  %v3093_v23 = vld [vmem:[%s4055_s1 + $0x2b0] sm:$0xff]   ;;  %v3094_v24 = vld [vmem:[%s4055_s1 + $0x268] sm:$0xff]  }
  0x1c   :  { %2682 = vmatpush3.bf16.msra.mxu0 %v3048_v26  ;;  %v3095_v25 = vld [vmem:[%s4055_s1 + $0x2e8] sm:$0xff]   ;;  %v3102_v32 = vld [vmem:[%s4055_s1 + $0x258] sm:$0xff]   ;;  %v3106_v36 = vld [vmem:[%s4055_s1 + $0x250] sm:$0xff]  }
  0x1d   :  { %2704 = vmatpush3.bf16.msra.mxu1 %v3049_v27  ;;  %2683 = vmatprep.subr.bf16.mxu0 %v3050_v28  ;;  %v3096_v26 = vld [vmem:[%s4055_s1 + $0x228] sm:$0xff]   ;;  %v3098_v28 = vld [vmem:[%s4055_s1 + $0x260] sm:$0xff]   ;;  %v3103_v33 = vld [vmem:[%s4055_s1 + $0x2d8] sm:$0xff]  }
  0x1e   :  { %2705 = vmatprep.subr.bf16.mxu1 %v3051_v29  ;;  %v3097_v27 = vld [vmem:[%s4055_s1 + $0x2a8] sm:$0xff]   ;;  %v3099_v29 = vld [vmem:[%s4055_s1 + $0x2e0] sm:$0xff]   ;;  %v3104_v34 = vld [vmem:[%s4055_s1 + $0x218] sm:$0xff]  }
  0x1f   :  { %v3105_v35 = vld [vmem:[%s4055_s1 + $0x298] sm:$0xff]   ;;  %v3108_v38 = vld [vmem:[%s4055_s1 + $0x210] sm:$0xff]  }
  0x20   :  { %2684 = vmatpush3.bf16.msra.mxu0 %v3052_v30  ;;  %v3100_v30 = vld [vmem:[%s4055_s1 + $0x220] sm:$0xff]   ;;  %v3134_v8 = vld [vmem:[%s4055_s1 + $0x358] sm:$0xff]   ;;  %v3138_v12 = vld [vmem:[%s4055_s1 + $0x350] sm:$0xff]  }
  0x21   :  { %2706 = vmatpush3.bf16.msra.mxu1 %v3053_v31  ;;  %2713 = vmatprep.subr.bf16.mxu0 %v3054_v40  ;;  %v3101_v31 = vld [vmem:[%s4055_s1 + $0x2a0] sm:$0xff]   ;;  %v3110_v40 = vld [vmem:[%s4055_s1 + $0x248] sm:$0xff]   ;;  %v3135_v9 = vld [vmem:[%s4055_s1 + $0x3d8] sm:$0xff]  }
  0x22   :  { %2735 = vmatprep.subr.bf16.mxu1 %v3055_v41  ;;  %v3111_v41 = vld [vmem:[%s4055_s1 + $0x2c8] sm:$0xff]   ;;  %v3139_v13 = vld [vmem:[%s4055_s1 + $0x3d0] sm:$0xff]  }
  0x23   :  { %1657 = vmatmul.mubr.bf16.vlgmr.msra.gmra.mxu0 %v57_v37  ;;  %v3107_v37 = vld [vmem:[%s4055_s1 + $0x2d0] sm:$0xff]  }
  0x24   :  { %1697 = vmatmul.mubr.bf16.vlgmr.msra.gmra.mxu1 %v59_v39  ;;  %2714 = vmatpush3.bf16.msra.mxu0 %v3056_v42  ;;  %v3109_v39 = vld [vmem:[%s4055_s1 + $0x290] sm:$0xff]   ;;  %v3112_v42 = vld [vmem:[%s4055_s1 + $0x208] sm:$0xff]  }
  0x25   :  { %2736 = vmatpush3.bf16.msra.mxu1 %v3057_v43  ;;  %2715 = vmatprep.subr.bf16.mxu0 %v3058_v44  ;;  %v3113_v43 = vld [vmem:[%s4055_s1 + $0x288] sm:$0xff]   ;;  %v3114_v44 = vld [vmem:[%s4055_s1 + $0x240] sm:$0xff]  }
  0x26   :  { %2737 = vmatprep.subr.bf16.mxu1 %v3059_v45  ;;  %1736 = vmatprep.mubr.bf16.mxu0 %v62_v10  ;;  %v3115_v45 = vld [vmem:[%s4055_s1 + $0x2c0] sm:$0xff]   ;;  %v3136_v10 = vld [vmem:[%s4055_s1 + $0x318] sm:$0xff]  }
  0x27   :  { %1776 = vmatprep.mubr.bf16.mxu1 %v64_v11  ;;  %v3137_v11 = vld [vmem:[%s4055_s1 + $0x398] sm:$0xff]  }
  0x28   :  { %2716 = vmatpush3.bf16.msra.mxu0 %v3060_v46  ;;  %v3116_v46 = vld [vmem:[%s4055_s1 + $0x200] sm:$0xff]  }
  0x29   :  { %2738 = vmatpush3.bf16.msra.mxu1 %v3061_v47  ;;  %2717 = vmatprep.subr.bf16.mxu0 %v3062_v48  ;;  %v3117_v47 = vld [vmem:[%s4055_s1 + $0x280] sm:$0xff]   ;;  %v42_v48 = vld [vmem:[%s4056_s0 + $0x48] sm:$0xff] }
  0x2a   :  { %2739 = vmatprep.subr.bf16.mxu1 %v3063_v49  ;;  %v66_v49 = vpack.c.bf16 %v42_v48, %v42_v48  ;;  %v3166_v48 = vld [vmem:[%s4055_s1 + $0x458] sm:$0xff]  }
  0x2c   :  { %2718 = vmatpush3.bf16.msra.mxu0 %v3064_v50  ;;  %v44_v50 = vld [vmem:[%s4056_s0 + $0x58] sm:$0xff] }
  0x2d   :  { %2740 = vmatpush3.bf16.msra.mxu1 %v3065_v51  ;;  %2719 = vmatprep.subr.bf16.mxu0 %v3066_v52  ;;  %v41_v51 = vld [vmem:[%s4056_s0 + $0x40] sm:$0xff]  ;;  %v43_v52 = vld [vmem:[%s4056_s0 + $0x50] sm:$0xff] }
  0x2e   :  { %2741 = vmatprep.subr.bf16.mxu1 %v3067_v53  ;;  %v68_v53 = vpack.c.bf16 %v44_v50, %v44_v50  ;;  %v3168_v50 = vld [vmem:[%s4055_s1 + $0x418] sm:$0xff]  }
  0x30   :  { %2720 = vmatpush3.bf16.msra.mxu0 %v3068_v54  ;;  %v65_v54 = vpack.c.bf16 %v41_v51, %v41_v51  ;;  %v3169_v51 = vld [vmem:[%s4055_s1 + $0x498] sm:$0xff]  }
  0x31   :  { %2742 = vmatpush3.bf16.msra.mxu1 %v3069_v55  ;;  %2721 = vmatprep.subr.bf16.mxu0 %v3070_v56  ;;  %v67_v55 = vpack.c.bf16 %v43_v52, %v43_v52  ;;  %v3118_v56 = vld [vmem:[%s4055_s1 + $0x378] sm:$0xff]   ;;  %v3170_v52 = vld [vmem:[%s4055_s1 + $0x450] sm:$0xff]  }
  0x32   :  { %2743 = vmatprep.subr.bf16.mxu1 %v3071_v57  ;;  %v3119_v57 = vld [vmem:[%s4055_s1 + $0x3f8] sm:$0xff]  }
  0x34   :  { %2722 = vmatpush3.bf16.msra.mxu0 %v3072_v58  ;;  %v3120_v58 = vld [vmem:[%s4055_s1 + $0x338] sm:$0xff]  }
  0x35   :  { %2744 = vmatpush3.bf16.msra.mxu1 %v3073_v59  ;;  %2723 = vmatprep.subr.bf16.mxu0 %v3074_v60  ;;  %v3121_v59 = vld [vmem:[%s4055_s1 + $0x3b8] sm:$0xff]   ;;  %v3122_v60 = vld [vmem:[%s4055_s1 + $0x370] sm:$0xff]  }
  0x36   :  { %2745 = vmatprep.subr.bf16.mxu1 %v3075_v61  ;;  %v3123_v61 = vld [vmem:[%s4055_s1 + $0x3f0] sm:$0xff]  }
  0x38   :  { %2724 = vmatpush3.bf16.msra.mxu0 %v3076_v62  ;;  %v3124_v62 = vld [vmem:[%s4055_s1 + $0x330] sm:$0xff]  }
  0x39   :  { %2746 = vmatpush3.bf16.msra.mxu1 %v3077_v63  ;;  %2725 = vmatprep.subr.bf16.mxu0 %v3078_v0  ;;  %v3125_v63 = vld [vmem:[%s4055_s1 + $0x3b0] sm:$0xff]   ;;  %v3126_v0 = vld [vmem:[%s4055_s1 + $0x368] sm:$0xff]  }
  0x3a   :  { %2747 = vmatprep.subr.bf16.mxu1 %v3079_v1  ;;  %v3127_v1 = vld [vmem:[%s4055_s1 + $0x3e8] sm:$0xff]  }
  0x3c   :  { %2726 = vmatpush3.bf16.msra.mxu0 %v3080_v2  ;;  %v3128_v2 = vld [vmem:[%s4055_s1 + $0x328] sm:$0xff]  }
  0x3d   :  { %2748 = vmatpush3.bf16.msra.mxu1 %v3081_v3  ;;  %2727 = vmatprep.subr.bf16.mxu0 %v3082_v4  ;;  %v3129_v3 = vld [vmem:[%s4055_s1 + $0x3a8] sm:$0xff]   ;;  %v3130_v4 = vld [vmem:[%s4055_s1 + $0x360] sm:$0xff]  }
  0x3e   :  { %2749 = vmatprep.subr.bf16.mxu1 %v3083_v5  ;;  %v3131_v5 = vld [vmem:[%s4055_s1 + $0x3e0] sm:$0xff]  }
  0x40   :  { %2728 = vmatpush3.bf16.msra.mxu0 %v3084_v6  ;;  %v3132_v6 = vld [vmem:[%s4055_s1 + $0x320] sm:$0xff]  }
  0x41   :  { %2750 = vmatpush3.bf16.msra.mxu1 %v3085_v7  ;;  %2757 = vmatprep.subr.bf16.mxu0 %v3086_v16  ;;  %v3133_v7 = vld [vmem:[%s4055_s1 + $0x3a0] sm:$0xff]   ;;  %v3142_v16 = vld [vmem:[%s4055_s1 + $0x348] sm:$0xff]  }
  0x42   :  { %2779 = vmatprep.subr.bf16.mxu1 %v3087_v17  ;;  %v3143_v17 = vld [vmem:[%s4055_s1 + $0x3c8] sm:$0xff]  }
  0x43   :  { %1737 = vmatmul.mubr.bf16.vlgmr.msra.gmra.mxu0 %v61_v14  ;;  %v3140_v14 = vld [vmem:[%s4055_s1 + $0x310] sm:$0xff]  }
  0x44   :  { %1777 = vmatmul.mubr.bf16.vlgmr.msra.gmra.mxu1 %v63_v15  ;;  %2758 = vmatpush3.bf16.msra.mxu0 %v3088_v18  ;;  %v3141_v15 = vld [vmem:[%s4055_s1 + $0x390] sm:$0xff]   ;;  %v3144_v18 = vld [vmem:[%s4055_s1 + $0x308] sm:$0xff]  }
  0x45   :  { %2780 = vmatpush3.bf16.msra.mxu1 %v3089_v19  ;;  %2759 = vmatprep.subr.bf16.mxu0 %v3090_v20  ;;  %v3145_v19 = vld [vmem:[%s4055_s1 + $0x388] sm:$0xff]   ;;  %v3146_v20 = vld [vmem:[%s4055_s1 + $0x340] sm:$0xff]  }
  0x46   :  { %2781 = vmatprep.subr.bf16.mxu1 %v3091_v21  ;;  %1816 = vmatprep.mubr.bf16.mxu0 %v66_v49  ;;  %v3147_v21 = vld [vmem:[%s4055_s1 + $0x3c0] sm:$0xff]   ;;  %v3167_v49 = vld [vmem:[%s4055_s1 + $0x4d8] sm:$0xff]  }
  0x47   :  { %1856 = vmatprep.mubr.bf16.mxu1 %v68_v53  ;;  %v3171_v53 = vld [vmem:[%s4055_s1 + $0x4d0] sm:$0xff]  }
  0x48   :  { %2760 = vmatpush3.bf16.msra.mxu0 %v3092_v22  ;;  %v3148_v22 = vld [vmem:[%s4055_s1 + $0x300] sm:$0xff]  }
  0x49   :  { %2782 = vmatpush3.bf16.msra.mxu1 %v3093_v23  ;;  %2761 = vmatprep.subr.bf16.mxu0 %v3094_v24  ;;  %v3149_v23 = vld [vmem:[%s4055_s1 + $0x380] sm:$0xff]   ;;  %v46_v24 = vld [vmem:[%s4056_s0 + $0x68] sm:$0xff] }
  0x4a   :  { %2783 = vmatprep.subr.bf16.mxu1 %v3095_v25  ;;  %v48_v25 = vld [vmem:[%s4056_s0 + $0x78] sm:$0xff] }
  0x4c   :  { %2762 = vmatpush3.bf16.msra.mxu0 %v3096_v26  ;;  %v45_v26 = vld [vmem:[%s4056_s0 + $0x60] sm:$0xff] }
  0x4d   :  { %2784 = vmatpush3.bf16.msra.mxu1 %v3097_v27  ;;  %2763 = vmatprep.subr.bf16.mxu0 %v3098_v28  ;;  %v70_v27 = vpack.c.bf16 %v46_v24, %v46_v24  ;;  %v72_v28 = vpack.c.bf16 %v48_v25, %v48_v25  ;;  %v3198_v24 = vld [vmem:[%s4055_s1 + $0x558] sm:$0xff]  }
  0x4e   :  { %2785 = vmatprep.subr.bf16.mxu1 %v3099_v29  ;;  %v69_v29 = vpack.c.bf16 %v45_v26, %v45_v26  ;;  %v3199_v25 = vld [vmem:[%s4055_s1 + $0x5d8] sm:$0xff]  }
  0x4f   :  { %v3200_v26 = vld [vmem:[%s4055_s1 + $0x518] sm:$0xff]  }
  0x50   :  { %2764 = vmatpush3.bf16.msra.mxu0 %v3100_v30  ;;  %v47_v30 = vld [vmem:[%s4056_s0 + $0x70] sm:$0xff] }
  0x51   :  { %2786 = vmatpush3.bf16.msra.mxu1 %v3101_v31  ;;  %2765 = vmatprep.subr.bf16.mxu0 %v3102_v32  ;;  %v71_v31 = vpack.c.bf16 %v47_v30, %v47_v30  ;;  %v3150_v32 = vld [vmem:[%s4055_s1 + $0x478] sm:$0xff]   ;;  %v3204_v30 = vld [vmem:[%s4055_s1 + $0x510] sm:$0xff]  }
  0x52   :  { %2787 = vmatprep.subr.bf16.mxu1 %v3103_v33  ;;  %v3151_v33 = vld [vmem:[%s4055_s1 + $0x4f8] sm:$0xff]  }
  0x54   :  { %2766 = vmatpush3.bf16.msra.mxu0 %v3104_v34  ;;  %v3152_v34 = vld [vmem:[%s4055_s1 + $0x438] sm:$0xff]  }
  0x55   :  { %2788 = vmatpush3.bf16.msra.mxu1 %v3105_v35  ;;  %2767 = vmatprep.subr.bf16.mxu0 %v3106_v36  ;;  %v3153_v35 = vld [vmem:[%s4055_s1 + $0x4b8] sm:$0xff]   ;;  %v3154_v36 = vld [vmem:[%s4055_s1 + $0x470] sm:$0xff]  }
  0x56   :  { %2789 = vmatprep.subr.bf16.mxu1 %v3107_v37  ;;  %v3155_v37 = vld [vmem:[%s4055_s1 + $0x4f0] sm:$0xff]  }
  0x58   :  { %2768 = vmatpush3.bf16.msra.mxu0 %v3108_v38  ;;  %v3156_v38 = vld [vmem:[%s4055_s1 + $0x430] sm:$0xff]  }
  0x59   :  { %2790 = vmatpush3.bf16.msra.mxu1 %v3109_v39  ;;  %2769 = vmatprep.subr.bf16.mxu0 %v3110_v40  ;;  %v3157_v39 = vld [vmem:[%s4055_s1 + $0x4b0] sm:$0xff]   ;;  %v3158_v40 = vld [vmem:[%s4055_s1 + $0x468] sm:$0xff]  }
  0x5a   :  { %2791 = vmatprep.subr.bf16.mxu1 %v3111_v41  ;;  %v3159_v41 = vld [vmem:[%s4055_s1 + $0x4e8] sm:$0xff]  }
  0x5c   :  { %2770 = vmatpush3.bf16.msra.mxu0 %v3112_v42  ;;  %v3160_v42 = vld [vmem:[%s4055_s1 + $0x428] sm:$0xff]  }
  0x5d   :  { %2792 = vmatpush3.bf16.msra.mxu1 %v3113_v43  ;;  %2771 = vmatprep.subr.bf16.mxu0 %v3114_v44  ;;  %v3161_v43 = vld [vmem:[%s4055_s1 + $0x4a8] sm:$0xff]   ;;  %v3162_v44 = vld [vmem:[%s4055_s1 + $0x460] sm:$0xff]  }
  0x5e   :  { %2793 = vmatprep.subr.bf16.mxu1 %v3115_v45  ;;  %v3163_v45 = vld [vmem:[%s4055_s1 + $0x4e0] sm:$0xff]  }
  0x60   :  { %2772 = vmatpush3.bf16.msra.mxu0 %v3116_v46  ;;  %v3164_v46 = vld [vmem:[%s4055_s1 + $0x420] sm:$0xff]  }
  0x61   :  { %2794 = vmatpush3.bf16.msra.mxu1 %v3117_v47  ;;  %2801 = vmatprep.subr.bf16.mxu0 %v3118_v56  ;;  %v3165_v47 = vld [vmem:[%s4055_s1 + $0x4a0] sm:$0xff]   ;;  %v3174_v56 = vld [vmem:[%s4055_s1 + $0x448] sm:$0xff]  }
  0x62   :  { %2823 = vmatprep.subr.bf16.mxu1 %v3119_v57  ;;  %v3175_v57 = vld [vmem:[%s4055_s1 + $0x4c8] sm:$0xff]  }
  0x63   :  { %1817 = vmatmul.mubr.bf16.vlgmr.msra.gmra.mxu0 %v65_v54  ;;  %v3172_v54 = vld [vmem:[%s4055_s1 + $0x410] sm:$0xff]  }
  0x64   :  { %1857 = vmatmul.mubr.bf16.vlgmr.msra.gmra.mxu1 %v67_v55  ;;  %2802 = vmatpush3.bf16.msra.mxu0 %v3120_v58  ;;  %v3173_v55 = vld [vmem:[%s4055_s1 + $0x490] sm:$0xff]   ;;  %v3176_v58 = vld [vmem:[%s4055_s1 + $0x408] sm:$0xff]  }
  0x65   :  { %2824 = vmatpush3.bf16.msra.mxu1 %v3121_v59  ;;  %2803 = vmatprep.subr.bf16.mxu0 %v3122_v60  ;;  %v3177_v59 = vld [vmem:[%s4055_s1 + $0x488] sm:$0xff]   ;;  %v3178_v60 = vld [vmem:[%s4055_s1 + $0x440] sm:$0xff]  }
  0x66   :  { %2825 = vmatprep.subr.bf16.mxu1 %v3123_v61  ;;  %1896 = vmatprep.mubr.bf16.mxu0 %v70_v27  ;;  %v3179_v61 = vld [vmem:[%s4055_s1 + $0x4c0] sm:$0xff]   ;;  %v3201_v27 = vld [vmem:[%s4055_s1 + $0x598] sm:$0xff]  }
  0x67   :  { %1936 = vmatprep.mubr.bf16.mxu1 %v72_v28  ;;  %v3202_v28 = vld [vmem:[%s4055_s1 + $0x550] sm:$0xff]  }
  0x68   :  { %2804 = vmatpush3.bf16.msra.mxu0 %v3124_v62  ;;  %v3180_v62 = vld [vmem:[%s4055_s1 + $0x400] sm:$0xff]  }
  0x69   :  { %2826 = vmatpush3.bf16.msra.mxu1 %v3125_v63  ;;  %2805 = vmatprep.subr.bf16.mxu0 %v3126_v0  ;;  %v3181_v63 = vld [vmem:[%s4055_s1 + $0x480] sm:$0xff]   ;;  %v50_v0 = vld [vmem:[%s4056_s0 + $0x88] sm:$0xff] }
  0x6a   :  { %2827 = vmatprep.subr.bf16.mxu1 %v3127_v1  ;;  %v52_v1 = vld [vmem:[%s4056_s0 + $0x98] sm:$0xff] }
  0x6c   :  { %2806 = vmatpush3.bf16.msra.mxu0 %v3128_v2  ;;  %v74_v2 = vpack.c.bf16 %v50_v0, %v50_v0  ;;  %v3216_v0 = vld [vmem:[%s4058_s3 + $0x28] sm:$0xff]  }
  0x6d   :  { %2828 = vmatpush3.bf16.msra.mxu1 %v3129_v3  ;;  %2807 = vmatprep.subr.bf16.mxu0 %v3130_v4  ;;  %v76_v3 = vpack.c.bf16 %v52_v1, %v52_v1  ;;  %v49_v4 = vld [vmem:[%s4056_s0 + $0x80] sm:$0xff] }
  0x6e   :  { %2829 = vmatprep.subr.bf16.mxu1 %v3131_v5  ;;  %v51_v5 = vld [vmem:[%s4056_s0 + $0x90] sm:$0xff]  ;;  %v3217_v1 = vld [vmem:[%s4058_s3 + $0x20] sm:$0xff]  }
  0x70   :  { %2808 = vmatpush3.bf16.msra.mxu0 %v3132_v6  ;;  %v73_v6 = vpack.c.bf16 %v49_v4, %v49_v4 }
  0x71   :  { %2830 = vmatpush3.bf16.msra.mxu1 %v3133_v7  ;;  %2809 = vmatprep.subr.bf16.mxu0 %v3134_v8  ;;  %v75_v7 = vpack.c.bf16 %v51_v5, %v51_v5  ;;  %v3182_v8 = vld [vmem:[%s4055_s1 + $0x578] sm:$0xff]  }
  0x72   :  { %2831 = vmatprep.subr.bf16.mxu1 %v3135_v9  ;;  %v3183_v9 = vld [vmem:[%s4055_s1 + $0x5f8] sm:$0xff]  }
  0x74   :  { %2810 = vmatpush3.bf16.msra.mxu0 %v3136_v10  ;;  %v3184_v10 = vld [vmem:[%s4055_s1 + $0x538] sm:$0xff]  }
  0x75   :  { %2832 = vmatpush3.bf16.msra.mxu1 %v3137_v11  ;;  %2811 = vmatprep.subr.bf16.mxu0 %v3138_v12  ;;  %v3185_v11 = vld [vmem:[%s4055_s1 + $0x5b8] sm:$0xff]   ;;  %v3186_v12 = vld [vmem:[%s4055_s1 + $0x570] sm:$0xff]  }
  0x76   :  { %2833 = vmatprep.subr.bf16.mxu1 %v3139_v13  ;;  %v3187_v13 = vld [vmem:[%s4055_s1 + $0x5f0] sm:$0xff]  }
  0x78   :  { %2812 = vmatpush3.bf16.msra.mxu0 %v3140_v14  ;;  %v3188_v14 = vld [vmem:[%s4055_s1 + $0x530] sm:$0xff]  }
  0x79   :  { %2834 = vmatpush3.bf16.msra.mxu1 %v3141_v15  ;;  %2813 = vmatprep.subr.bf16.mxu0 %v3142_v16  ;;  %v3189_v15 = vld [vmem:[%s4055_s1 + $0x5b0] sm:$0xff]   ;;  %v3190_v16 = vld [vmem:[%s4055_s1 + $0x568] sm:$0xff]  }
  0x7a   :  { %2835 = vmatprep.subr.bf16.mxu1 %v3143_v17  ;;  %v3191_v17 = vld [vmem:[%s4055_s1 + $0x5e8] sm:$0xff]  }
  0x7c   :  { %2814 = vmatpush3.bf16.msra.mxu0 %v3144_v18  ;;  %v3192_v18 = vld [vmem:[%s4055_s1 + $0x528] sm:$0xff]  }
  0x7d   :  { %2836 = vmatpush3.bf16.msra.mxu1 %v3145_v19  ;;  %2815 = vmatprep.subr.bf16.mxu0 %v3146_v20  ;;  %v3193_v19 = vld [vmem:[%s4055_s1 + $0x5a8] sm:$0xff]   ;;  %v3194_v20 = vld [vmem:[%s4055_s1 + $0x560] sm:$0xff]  }
  0x7e   :  { %2837 = vmatprep.subr.bf16.mxu1 %v3147_v21  ;;  %v3195_v21 = vld [vmem:[%s4055_s1 + $0x5e0] sm:$0xff]  }
  0x80   :  { %2816 = vmatpush3.bf16.msra.mxu0 %v3148_v22  ;;  %v3196_v22 = vld [vmem:[%s4055_s1 + $0x520] sm:$0xff]  }
  0x81   :  { %2838 = vmatpush3.bf16.msra.mxu1 %v3149_v23  ;;  %2845 = vmatprep.subr.bf16.mxu0 %v3150_v32  ;;  %v3197_v23 = vld [vmem:[%s4055_s1 + $0x5a0] sm:$0xff]   ;;  %v3206_v32 = vld [vmem:[%s4055_s1 + $0x548] sm:$0xff]  }
  0x82   :  { %2867 = vmatprep.subr.bf16.mxu1 %v3151_v33  ;;  %v3207_v33 = vld [vmem:[%s4055_s1 + $0x5c8] sm:$0xff]  }
  0x83   :  { %1897 = vmatmul.mubr.bf16.vlgmr.msra.gmra.mxu0 %v69_v29  ;;  %v3203_v29 = vld [vmem:[%s4055_s1 + $0x5d0] sm:$0xff]  }
  0x84   :  { %1937 = vmatmul.mubr.bf16.vlgmr.msra.gmra.mxu1 %v71_v31  ;;  %2846 = vmatpush3.bf16.msra.mxu0 %v3152_v34  ;;  %v3205_v31 = vld [vmem:[%s4055_s1 + $0x590] sm:$0xff]   ;;  %v3208_v34 = vld [vmem:[%s4055_s1 + $0x508] sm:$0xff]  }
  0x85   :  { %2868 = vmatpush3.bf16.msra.mxu1 %v3153_v35  ;;  %2847 = vmatprep.subr.bf16.mxu0 %v3154_v36  ;;  %v3209_v35 = vld [vmem:[%s4055_s1 + $0x588] sm:$0xff]   ;;  %v3210_v36 = vld [vmem:[%s4055_s1 + $0x540] sm:$0xff]  }
  0x86   :  { %2869 = vmatprep.subr.bf16.mxu1 %v3155_v37  ;;  %1976 = vmatprep.mubr.bf16.mxu0 %v74_v2  ;;  %v3211_v37 = vld [vmem:[%s4055_s1 + $0x5c0] sm:$0xff]   ;;  %v3218_v2 = vld [vmem:[%s4058_s3 + $0x18] sm:$0xff]  }
  0x87   :  { %2016 = vmatprep.mubr.bf16.mxu1 %v76_v3 }
  0x88   :  { %2848 = vmatpush3.bf16.msra.mxu0 %v3156_v38  ;;  %v3212_v38 = vld [vmem:[%s4055_s1 + $0x500] sm:$0xff]  }
  0x89   :  { %2870 = vmatpush3.bf16.msra.mxu1 %v3157_v39  ;;  %2849 = vmatprep.subr.bf16.mxu0 %v3158_v40  ;;  %v3213_v39 = vld [vmem:[%s4055_s1 + $0x580] sm:$0xff]   ;;  %v54_v40 = vld [vmem:[%s4056_s0 + $0xa8] sm:$0xff] }
  0x8a   :  { %2871 = vmatprep.subr.bf16.mxu1 %v3159_v41  ;;  %v78_v41 = vpack.c.bf16 %v54_v40, %v54_v40 }
  0x8c   :  { %2850 = vmatpush3.bf16.msra.mxu0 %v3160_v42  ;;  %v56_v42 = vld [vmem:[%s4056_s0 + $0xb8] sm:$0xff] }
  0x8d   :  { %2872 = vmatpush3.bf16.msra.mxu1 %v3161_v43  ;;  %2851 = vmatprep.subr.bf16.mxu0 %v3162_v44  ;;  %v53_v43 = vld [vmem:[%s4056_s0 + $0xa0] sm:$0xff]  ;;  %v55_v44 = vld [vmem:[%s4056_s0 + $0xb0] sm:$0xff] }
  0x8e   :  { %2873 = vmatprep.subr.bf16.mxu1 %v3163_v45  ;;  %v80_v45 = vpack.c.bf16 %v56_v42, %v56_v42 }
  0x90   :  { %2852 = vmatpush3.bf16.msra.mxu0 %v3164_v46  ;;  %v77_v46 = vpack.c.bf16 %v53_v43, %v53_v43 }
  0x91   :  { %2874 = vmatpush3.bf16.msra.mxu1 %v3165_v47  ;;  %2853 = vmatprep.subr.bf16.mxu0 %v3166_v48  ;;  %v79_v47 = vpack.c.bf16 %v55_v44, %v55_v44 }
  0x92   :  { %2875 = vmatprep.subr.bf16.mxu1 %v3167_v49 }
  0x94   :  { %2854 = vmatpush3.bf16.msra.mxu0 %v3168_v50  ;;  %v2449_v50 = vld [vmem:[%s4057_s2] ss:$0 sm:$0xff] }
  0x95   :  { %2876 = vmatpush3.bf16.msra.mxu1 %v3169_v51  ;;  %2855 = vmatprep.subr.bf16.mxu0 %v3170_v52 }
  0x96   :  { %2877 = vmatprep.subr.bf16.mxu1 %v3171_v53 }
  0x98   :  { %2856 = vmatpush3.bf16.msra.mxu0 %v3172_v54 }
  0x99   :  { %2878 = vmatpush3.bf16.msra.mxu1 %v3173_v55  ;;  %2857 = vmatprep.subr.bf16.mxu0 %v3174_v56 }
  0x9a   :  { %2879 = vmatprep.subr.bf16.mxu1 %v3175_v57 }
  0x9c   :  { %2858 = vmatpush3.bf16.msra.mxu0 %v3176_v58 }
  0x9d   :  { %2880 = vmatpush3.bf16.msra.mxu1 %v3177_v59  ;;  %2859 = vmatprep.subr.bf16.mxu0 %v3178_v60 }
  0x9e   :  { %2881 = vmatprep.subr.bf16.mxu1 %v3179_v61  ;;  %v3238_v61 = vmov 0.0  }
  0xa0   :  { %2860 = vmatpush3.bf16.msra.mxu0 %v3180_v62  ;;  %v3214_v62 = vld [vmem:[%s4058_s3 + $0x38] sm:$0xff]  }
  0xa1   :  { %2882 = vmatpush3.bf16.msra.mxu1 %v3181_v63  ;;  %2889 = vmatprep.subr.bf16.mxu0 %v3182_v8  ;;  %v3215_v63 = vld [vmem:[%s4058_s3 + $0x30] sm:$0xff]  }
  0xa2   :  { %2911 = vmatprep.subr.bf16.mxu1 %v3183_v9 }
  0xa3   :  { %1977 = vmatmul.mubr.bf16.vlgmr.msra.gmra.mxu0 %v73_v6 }
  0xa4   :  { %2017 = vmatmul.mubr.bf16.vlgmr.msra.gmra.mxu1 %v75_v7  ;;  %2890 = vmatpush3.bf16.msra.mxu0 %v3184_v10 }
  0xa5   :  { %2912 = vmatpush3.bf16.msra.mxu1 %v3185_v11  ;;  %2891 = vmatprep.subr.bf16.mxu0 %v3186_v12 }
  0xa6   :  { %2913 = vmatprep.subr.bf16.mxu1 %v3187_v13  ;;  %2056 = vmatprep.mubr.bf16.mxu0 %v78_v41  ;;  %v3219_v13 = vld [vmem:[%s4058_s3 + $0x10] sm:$0xff]  }
  0xa7   :  { %2096 = vmatprep.mubr.bf16.mxu1 %v80_v45 }
  0xa8   :  { %2892 = vmatpush3.bf16.msra.mxu0 %v3188_v14 }
  0xa9   :  { %2914 = vmatpush3.bf16.msra.mxu1 %v3189_v15  ;;  %2893 = vmatprep.subr.bf16.mxu0 %v3190_v16  ;;  %v3220_v16 = vld [vmem:[%s4058_s3 + $0x8] sm:$0xff]  }
  0xaa   :  { %2915 = vmatprep.subr.bf16.mxu1 %v3191_v17  ;;  %v3221_v17 = vld [vmem:[%s4058_s3] sm:$0xff]  }
  0xac   :  { %2894 = vmatpush3.bf16.msra.mxu0 %v3192_v18  ;;  %v3222_v18 = vld [vmem:[%s4059_s5 + $0x38] sm:$0xff]  }
  0xad   :  { %2916 = vmatpush3.bf16.msra.mxu1 %v3193_v19  ;;  %2895 = vmatprep.subr.bf16.mxu0 %v3194_v20  ;;  %v3223_v19 = vld [vmem:[%s4059_s5 + $0x30] sm:$0xff]   ;;  %v3224_v20 = vld [vmem:[%s4059_s5 + $0x28] sm:$0xff]  }
  0xae   :  { %2917 = vmatprep.subr.bf16.mxu1 %v3195_v21  ;;  %v3225_v21 = vld [vmem:[%s4059_s5 + $0x20] sm:$0xff]  }
  0xb0   :  { %2896 = vmatpush3.bf16.msra.mxu0 %v3196_v22 }
  0xb1   :  { %2918 = vmatpush3.bf16.msra.mxu1 %v3197_v23  ;;  %2897 = vmatprep.subr.bf16.mxu0 %v3198_v24  ;;  %v3226_v23 = vld [vmem:[%s4059_s5 + $0x18] sm:$0xff]  }
  0xb2   :  { %2919 = vmatprep.subr.bf16.mxu1 %v3199_v25 }
  0xb4   :  { %2898 = vmatpush3.bf16.msra.mxu0 %v3200_v26 }
  0xb5   :  { %2920 = vmatpush3.bf16.msra.mxu1 %v3201_v27  ;;  %2899 = vmatprep.subr.bf16.mxu0 %v3202_v28 }
  0xb6   :  { %2921 = vmatprep.subr.bf16.mxu1 %v3203_v29 }
  0xb8   :  { %2900 = vmatpush3.bf16.msra.mxu0 %v3204_v30  ;;  %v3227_v30 = vld [vmem:[%s4059_s5 + $0x10] sm:$0xff]  }
  0xb9   :  { %2922 = vmatpush3.bf16.msra.mxu1 %v3205_v31  ;;  %2901 = vmatprep.subr.bf16.mxu0 %v3206_v32 }
  0xba   :  { %2923 = vmatprep.subr.bf16.mxu1 %v3207_v33 }
  0xbc   :  { %2902 = vmatpush3.bf16.msra.mxu0 %v3208_v34 }
  0xbd   :  { %2924 = vmatpush3.bf16.msra.mxu1 %v3209_v35  ;;  %2903 = vmatprep.subr.bf16.mxu0 %v3210_v36 }
  0xbe   :  { %2925 = vmatprep.subr.bf16.mxu1 %v3211_v37 }
  0xc0   :  { %2904 = vmatpush3.bf16.msra.mxu0 %v3212_v38 }
  0xc1   :  { %2926 = vmatpush3.bf16.msra.mxu1 %v3213_v39  ;;  %2960 = vmatprep.subr.bf16.mxu0 %v3238_v61 }
  0xc2   :  { %2980 = vmatprep.subr.bf16.mxu1 %v3238_v61 }
  0xc3   :  { %2057 = vmatmul.mubr.bf16.vlgmr.msra.gmra.mxu0 %v77_v46 }
  0xc4   :  { %2097 = vmatmul.mubr.bf16.vlgmr.msra.gmra.mxu1 %v79_v47  ;;  %2961 = vmatpush3.bf16.msra.mxu0 %v3214_v62 }
  0xc5   :  { %2962 = vmatprep.subr.bf16.mxu0 %v3238_v61  ;;  %2976 = vmatprep.mubr.msk.bf16.mxu0 %vm3239_vm0, %v3238_v61 }
  0xc6   :  { %2996 = vmatprep.mubr.msk.bf16.mxu1 %vm3239_vm0, %v3238_v61  ;;  %2981 = vmatpush3.bf16.msra.mxu1 %v3222_v18  ;;  %v3235_v18 = vld [vmem:[%s4060_s7 + $0x10] sm:$0xff]  }
  0xc7   :  { %2982 = vmatprep.subr.bf16.mxu1 %v3238_v61 }
  0xc8   :  { %2963 = vmatpush3.bf16.msra.mxu0 %v3215_v63 }
  0xc9   :  { %2964 = vmatprep.subr.bf16.mxu0 %v3238_v61 }
  0xca   :  { %2983 = vmatpush3.bf16.msra.mxu1 %v3223_v19  ;;  %v2642_v19 = vld [vmem:[%s4061_s4] ss:$0 sm:$0xff] }
  0xcb   :  { %2984 = vmatprep.subr.bf16.mxu1 %v3238_v61 }
  0xcc   :  { %2965 = vmatpush3.bf16.msra.mxu0 %v3216_v0 }
  0xcd   :  { %2966 = vmatprep.subr.bf16.mxu0 %v3238_v61 }
  0xce   :  { %2985 = vmatpush3.bf16.msra.mxu1 %v3224_v20 }
  0xcf   :  { %2986 = vmatprep.subr.bf16.mxu1 %v3238_v61 }
  0xd0   :  { %2967 = vmatpush3.bf16.msra.mxu0 %v3217_v1 }
  0xd1   :  { %2968 = vmatprep.subr.bf16.mxu0 %v3238_v61 }
  0xd2   :  { %2987 = vmatpush3.bf16.msra.mxu1 %v3225_v21 }
  0xd3   :  { %2988 = vmatprep.subr.bf16.mxu1 %v3238_v61 }
  0xd4   :  { %2969 = vmatpush3.bf16.msra.mxu0 %v3218_v2 }
  0xd5   :  { %2970 = vmatprep.subr.bf16.mxu0 %v3238_v61 }
  0xd6   :  { %2989 = vmatpush3.bf16.msra.mxu1 %v3226_v23 }
  0xd7   :  { %2990 = vmatprep.subr.bf16.mxu1 %v3238_v61 }
  0xd8   :  { %2971 = vmatpush3.bf16.msra.mxu0 %v3219_v13  ;;  %v3230_v13 = vld [vmem:[%s4060_s7 + $0x38] sm:$0xff]  }
  0xd9   :  { %2972 = vmatprep.subr.bf16.mxu0 %v3238_v61 }
  0xda   :  { %2991 = vmatpush3.bf16.msra.mxu1 %v3227_v30 }
  0xdb   :  { %2992 = vmatprep.subr.bf16.mxu1 %v3238_v61 }
  0xdc   :  { %2973 = vmatpush3.bf16.msra.mxu0 %v3220_v16  ;;  %v3233_v16 = vld [vmem:[%s4060_s7 + $0x20] sm:$0xff]  }
  0xdd   :  { %2974 = vmatprep.subr.bf16.mxu0 %v3238_v61 }
  0xe0   :  { %2975 = vmatpush3.bf16.msra.mxu0 %v3221_v17  ;;  %v3234_v17 = vld [vmem:[%s4060_s7 + $0x18] sm:$0xff]  }
  0xe1   :  { %3000 = vmatprep.subr.bf16.mxu0 %v3238_v61 }
  0xe3   :  { %v2685_v48 = vpop.f32.mrf.mxu0 }
  0xe4   :  { %v2707_v49 = vpop.f32.mrf.mxu1 }
  0xe5   :  { %v2686_v51 = vpop.f32.mrf.mxu0 }
  0xe6   :  { %v2708_v52 = vpop.f32.mrf.mxu1  ;;  %v2687_v53 = vadd.f32 %v2686_v51, %v2685_v48 }
  0xe7   :  { %v2709_v54 = vadd.f32 %v2708_v52, %v2707_v49  ;;  %v2688_v55 = vpop.f32.mrf.mxu0 }
  0xe8   :  { %v2710_v56 = vpop.f32.mrf.mxu1  ;;  %v1659_v57 = vadd.f32 %v2687_v53, %v2449_v50 }
  0xe9   :  { %v2689_v58 = vpop.f32.mrf.mxu0 }
  0xea   :  { %v2711_v59 = vpop.f32.mrf.mxu1  ;;  %v1699_v60 = vadd.f32 %v2709_v54, %v1659_v57 }
 0x103   :  { %v2729_v3 = vpop.f32.mrf.mxu0 }
 0x104   :  { %v2751_v4 = vpop.f32.mrf.mxu1 }
 0x105   :  { %v2730_v5 = vpop.f32.mrf.mxu0 }
 0x106   :  { %v2731_v6 = vadd.f32 %v2730_v5, %v2729_v3  ;;  %v2752_v7 = vpop.f32.mrf.mxu1 }
 0x107   :  { %v2753_v8 = vadd.f32 %v2752_v7, %v2751_v4  ;;  %v2732_v9 = vpop.f32.mrf.mxu0 }
 0x108   :  { %v1739_v10 = vadd.f32 %v2731_v6, %v1699_v60  ;;  %v2754_v11 = vpop.f32.mrf.mxu1 }
 0x109   :  { %v2733_v12 = vpop.f32.mrf.mxu0  ;;  %v3228_v11 = vld [vmem:[%s4059_s5 + $0x8] sm:$0xff]  }
 0x10a   :  { %v1779_v14 = vadd.f32 %v2753_v8, %v1739_v10  ;;  %v2755_v15 = vpop.f32.mrf.mxu1  ;;  %2993 = vmatpush3.bf16.msra.mxu1 %v3228_v11  ;;  %v3229_v12 = vld [vmem:[%s4059_s5] sm:$0xff]  }
 0x10b   :  { %2994 = vmatprep.subr.bf16.mxu1 %v3238_v61  ;;  %v3232_v15 = vld [vmem:[%s4060_s7 + $0x28] sm:$0xff]  }
 0x10e   :  { %2995 = vmatpush3.bf16.msra.mxu1 %v3229_v12 }
 0x123   :  { %v2773_v22 = vpop.f32.mrf.mxu0 }
 0x124   :  { %v2795_v24 = vpop.f32.mrf.mxu1 }
 0x125   :  { %v2774_v25 = vpop.f32.mrf.mxu0 }
 0x126   :  { %v2775_v26 = vadd.f32 %v2774_v25, %v2773_v22  ;;  %v2796_v27 = vpop.f32.mrf.mxu1 }
 0x127   :  { %v2797_v28 = vadd.f32 %v2796_v27, %v2795_v24  ;;  %v2776_v29 = vpop.f32.mrf.mxu0  ;;  %v3236_v27 = vld [vmem:[%s4060_s7 + $0x8] sm:$0xff]  }
 0x128   :  { %v1819_v31 = vadd.f32 %v2775_v26, %v1779_v14  ;;  %v2798_v32 = vpop.f32.mrf.mxu1  ;;  %v3231_v14 = vld [vmem:[%s4060_s7 + $0x30] sm:$0xff]   ;;  %v2651_v29 = vld [vmem:[%s4062_s6] ss:$0 sm:$0xff] }
 0x129   :  { %v2777_v33 = vpop.f32.mrf.mxu0 }
 0x12a   :  { %v1859_v34 = vadd.f32 %v2797_v28, %v1819_v31  ;;  %v2799_v35 = vpop.f32.mrf.mxu1  ;;  %v3237_v28 = vld [vmem:[%s4060_s7] sm:$0xff]  }
 0x143   :  { %v2817_v36 = vpop.f32.mrf.mxu0 }
 0x144   :  { %v2839_v37 = vpop.f32.mrf.mxu1 }
 0x145   :  { %v2818_v38 = vpop.f32.mrf.mxu0 }
 0x146   :  { %v2840_v39 = vpop.f32.mrf.mxu1  ;;  %v2819_v52 = vadd.f32 %v2818_v38, %v2817_v36 }
 0x147   :  { %v2820_v40 = vpop.f32.mrf.mxu0  ;;  %v2841_v54 = vadd.f32 %v2840_v39, %v2839_v37 }
 0x148   :  { %v2842_v41 = vpop.f32.mrf.mxu1  ;;  %v1899_v53 = vadd.f32 %v2819_v52, %v1859_v34 }
 0x149   :  { %v2821_v42 = vpop.f32.mrf.mxu0 }
 0x14a   :  { %v2843_v43 = vpop.f32.mrf.mxu1  ;;  %v1939_v56 = vadd.f32 %v2841_v54, %v1899_v53 }
 0x163   :  { %v2861_v44 = vpop.f32.mrf.mxu0 }
 0x164   :  { %v2883_v45 = vpop.f32.mrf.mxu1 }
 0x165   :  { %v2862_v46 = vpop.f32.mrf.mxu0 }
 0x166   :  { %v2884_v47 = vpop.f32.mrf.mxu1  ;;  %v2863_v55 = vadd.f32 %v2862_v46, %v2861_v44 }
 0x167   :  { %v2864_v48 = vpop.f32.mrf.mxu0  ;;  %v2885_v58 = vadd.f32 %v2884_v47, %v2883_v45 }
 0x168   :  { %v2886_v49 = vpop.f32.mrf.mxu1  ;;  %v1979_v57 = vadd.f32 %v2863_v55, %v1939_v56 }
 0x169   :  { %v2865_v50 = vpop.f32.mrf.mxu0 }
 0x16a   :  { %v2887_v51 = vpop.f32.mrf.mxu1  ;;  %v2019_v63 = vadd.f32 %v2885_v58, %v1979_v57 }
 0x183   :  { %v2905_v59 = vpop.f32.mrf.mxu0 }
 0x184   :  { %v2927_v60 = vpop.f32.mrf.mxu1 }
 0x185   :  { %v2906_v62 = vpop.f32.mrf.mxu0 }
 0x186   :  { %v2907_v0 = vadd.f32 %v2906_v62, %v2905_v59  ;;  %v2928_v1 = vpop.f32.mrf.mxu1 }
 0x187   :  { %v2908_v2 = vpop.f32.mrf.mxu0  ;;  %v2929_v4 = vadd.f32 %v2928_v1, %v2927_v60 }
 0x188   :  { %v2059_v3 = vadd.f32 %v2907_v0, %v2019_v63  ;;  %v2930_v5 = vpop.f32.mrf.mxu1 }
 0x189   :  { %v2909_v6 = vpop.f32.mrf.mxu0 }
 0x18a   :  { %v2099_v7 = vadd.f32 %v2929_v4, %v2059_v3  ;;  %v2931_v8 = vpop.f32.mrf.mxu1 }
 0x18c   :  { %v2104_v9 = vmax.f32 %v2099_v7, 0.0 }
 0x18e   :  { %v2105_v10 = vpack.c.bf16 %v2104_v9, %v2104_v9 }
 0x190   :  { %2977 = vmatmul.mubr.bf16.vlgmr.msra.gmra.mxu0 %v2105_v10 }
 0x191   :  { %3016 = vmatprep.mubr.msk.bf16.mxu0 %vm3239_vm0, %v3238_v61  ;;  %3001 = vmatpush3.bf16.msra.mxu0 %v3230_v13 }
 0x192   :  { %3002 = vmatprep.subr.bf16.mxu0 %v3238_v61 }
 0x195   :  { %3003 = vmatpush3.bf16.msra.mxu0 %v3231_v14 }
 0x196   :  { %3004 = vmatprep.subr.bf16.mxu0 %v3238_v61 }
 0x199   :  { %3005 = vmatpush3.bf16.msra.mxu0 %v3232_v15 }
 0x19a   :  { %3006 = vmatprep.subr.bf16.mxu0 %v3238_v61 }
 0x19d   :  { %3007 = vmatpush3.bf16.msra.mxu0 %v3233_v16 }
 0x19e   :  { %3008 = vmatprep.subr.bf16.mxu0 %v3238_v61 }
 0x1a1   :  { %3009 = vmatpush3.bf16.msra.mxu0 %v3234_v17 }
 0x1a2   :  { %3010 = vmatprep.subr.bf16.mxu0 %v3238_v61 }
 0x1a5   :  { %3011 = vmatpush3.bf16.msra.mxu0 %v3235_v18 }
 0x1a6   :  { %3012 = vmatprep.subr.bf16.mxu0 %v3238_v61 }
 0x1a9   :  { %3013 = vmatpush3.bf16.msra.mxu0 %v3236_v27 }
 0x1aa   :  { %3014 = vmatprep.subr.bf16.mxu0 %v3238_v61  ;;  %v2660_v61 = vld [vmem:[%s4063_s8] ss:$0 sm:$0xff] }
 0x1ad   :  { %3015 = vmatpush3.bf16.msra.mxu0 %v3237_v28 }
 0x250   :  { %v2211_v20 = vpop.f32.mrf.mxu0 }
 0x251   :  { %v2212_v21 = vadd.f32 %v2642_v19, %v2211_v20 }
 0x252   :  { %v2978_v22 = vpop.f32.mrf.mxu0 }
 0x253   :  { %v2217_v23 = vmax.f32 %v2212_v21, 0.0 }
 0x254   :  { %v2214_v24 = vpop.f32.mrf.mxu0 }
 0x255   :  { %v2218_v25 = vpack.c.bf16 %v2217_v23, %v2217_v23 }
 0x256   :  { %v2979_v26 = vpop.f32.mrf.mxu0 }
 0x257   :  { %2997 = vmatmul.mubr.bf16.vlgmr.msra.gmra.mxu1 %v2218_v25 }
 0x317   :  { %v2324_v30 = vpop.f32.mrf.mxu1 }
 0x318   :  { %v2325_v31 = vadd.f32 %v2651_v29, %v2324_v30 }
 0x319   :  { %v2998_v32 = vpop.f32.mrf.mxu1 }
 0x31a   :  { %v2330_v33 = vmax.f32 %v2325_v31, 0.0 }
 0x31b   :  { %v2327_v34 = vpop.f32.mrf.mxu1 }
 0x31c   :  { %v2331_v35 = vpack.c.bf16 %v2330_v33, %v2330_v33 }
 0x31d   :  { %v2999_v36 = vpop.f32.mrf.mxu1 }
 0x31e   :  { %3017 = vmatmul.mubr.bf16.vlgmr.msra.gmra.mxu0 %v2331_v35 }
 0x3de   :  { %v2437_v37 = vpop.f32.mrf.mxu0 }
 0x3df   :  { %v2438_v38 = vadd.f32 %v2660_v61, %v2437_v37 }
 0x3e0   :  { %v3018_v39 = vpop.f32.mrf.mxu0 }
 0x3e1   :  { %v2443_v40 = vpack.c.bf16 %v2438_v38, %v2438_v38 }
 0x3e2   :  { %v2440_v41 = vpop.f32.mrf.mxu0 }
 0x3e3   :  { %2444 = vst [vmem:[%s4064_s9] sm:$0xf] %v2443_v40 }
 0x3e4   :  { %v3019_v42 = vpop.f32.mrf.mxu0 }

</bundles_post_ra>
